<compile_context>
chip_gen: v5e
topology: v5e:2x2
jax: 0.10.0
libtpu: 0.0.40
codegen_flags: <defaults>
</compile_context>

<pallas_src>
import jax
import jax.numpy as jnp
from jax.experimental import pallas as pl
from jax.experimental.pallas import tpu as pltpu

_LANES = 128  # one f32 vreg row


def _mtl_kernel(s_ref, out_ref):
    # s_ref: SMEM f32[4] = [log_var0, log_var1, entity_loss, relation_loss]
    lv0 = s_ref[0]
    lv1 = s_ref[1]
    el = s_ref[2]
    rl = s_ref[3]

    # Build full lane rows from SMEM scalars: exp rides the EUP slot, the
    # broadcast/mul/add ride the VPU. Every lane of `out` holds the answer,
    # so the store is a lane-dense unmasked vst.
    loss0 = jnp.exp(jnp.full((1, _LANES), -lv0, jnp.float32)) * el + lv0
    loss1 = jnp.exp(jnp.full((1, _LANES), -lv1, jnp.float32)) * rl + lv1
    out_ref[...] = loss0 + loss1


@jax.jit
def multi_task_loss(log_vars, entity_loss, relation_loss):
    """Pallas implementation of MultiTaskLossWrapper.forward (scalar losses)."""
    lv = jnp.asarray(log_vars, jnp.float32)
    el = jnp.asarray(entity_loss, jnp.float32).reshape(())
    rl = jnp.asarray(relation_loss, jnp.float32).reshape(())

    # Single tiny SMEM payload: no HBM tile packing, no VMEM input DMA.
    scalars = jnp.stack([lv[0], lv[1], el, rl])  # f32[4]

    out = pl.pallas_call(
        _mtl_kernel,
        out_shape=jax.ShapeDtypeStruct((1, _LANES), jnp.float32),
        in_specs=[pl.BlockSpec(memory_space=pltpu.MemorySpace.SMEM)],
        out_specs=pl.BlockSpec(memory_space=pltpu.MemorySpace.VMEM),
        cost_estimate=pl.CostEstimate(
            flops=6 * _LANES,            # 2x (mul+add) + final add, per lane
            transcendentals=2 * _LANES,  # 2 full-row exps
            bytes_accessed=4 * 4 + 4 * _LANES,
        ),
    )(scalars)
    return out[0, 0]


def _reference(log_vars, entity_loss, relation_loss):
    lv = jnp.asarray(log_vars, jnp.float32)
    return (jnp.exp(-lv[0]) * entity_loss + lv[0]
            + jnp.exp(-lv[1]) * relation_loss + lv[1])


if __name__ == "__main__":
    task_num = 2

    # Parameters: nn.Parameter(torch.zeros(task_num)) -> deterministic zeros.
    log_vars = jnp.zeros((task_num,), dtype=jnp.float32)

    # Deterministic example "losses" (scalar tensors, as in typical usage).
    key = jax.random.PRNGKey(0)
    k0, k1 = jax.random.split(key)
    entity_loss = jnp.abs(jax.random.normal(k0, (), dtype=jnp.float32))
    relation_loss = jnp.abs(jax.random.normal(k1, (), dtype=jnp.float32))

    # Run with the as-initialized (zero) log_vars ...
    out0 = jax.block_until_ready(multi_task_loss(log_vars, entity_loss, relation_loss))
    ref0 = _reference(log_vars, entity_loss, relation_loss)

    # ... and with non-trivial log_vars to exercise the exp path.
    log_vars_nz = jnp.array([0.3, -0.7], dtype=jnp.float32)
    out1 = jax.block_until_ready(multi_task_loss(log_vars_nz, entity_loss, relation_loss))
    ref1 = _reference(log_vars_nz, entity_loss, relation_loss)

    assert jnp.allclose(out0, ref0, rtol=1e-6, atol=1e-6), (out0, ref0)
    assert jnp.allclose(out1, ref1, rtol=1e-6, atol=1e-6), (out1, ref1)
    print("KERNEL_OK")
</pallas_src>

<mosaic_0001>
module attributes {stable_mosaic.version = 11 : i64} {
  func.func @_mtl_kernel(%arg0: memref<4xf32, #tpu.memory_space<smem>>, %arg1: memref<1x128xf32, #tpu.memory_space<vmem>>) attributes {dimension_semantics = [], scalar_prefetch = 0 : i64, scratch_operands = 0 : i64, tpu.core_type = #tpu.core_type<tc>} {
    %c0 = arith.constant 0 : index
    %0 = memref.load %arg0[%c0] : memref<4xf32, #tpu.memory_space<smem>>
    %c1 = arith.constant 1 : index
    %1 = memref.load %arg0[%c1] : memref<4xf32, #tpu.memory_space<smem>>
    %c2 = arith.constant 2 : index
    %2 = memref.load %arg0[%c2] : memref<4xf32, #tpu.memory_space<smem>>
    %c3 = arith.constant 3 : index
    %3 = memref.load %arg0[%c3] : memref<4xf32, #tpu.memory_space<smem>>
    %cst = arith.constant 0.000000e+00 : f32
    %4 = arith.subf %cst, %0 : f32
    %5 = vector.broadcast %4 : f32 to vector<1x128xf32>
    %6 = math.exp %5 : vector<1x128xf32>
    %7 = vector.broadcast %2 : f32 to vector<1x128xf32>
    %8 = arith.mulf %6, %7 : vector<1x128xf32>
    %9 = vector.broadcast %0 : f32 to vector<1x128xf32>
    %10 = arith.addf %8, %9 : vector<1x128xf32>
    %cst_0 = arith.constant 0.000000e+00 : f32
    %11 = arith.subf %cst_0, %1 : f32
    %12 = vector.broadcast %11 : f32 to vector<1x128xf32>
    %13 = math.exp %12 : vector<1x128xf32>
    %14 = vector.broadcast %3 : f32 to vector<1x128xf32>
    %15 = arith.mulf %13, %14 : vector<1x128xf32>
    %16 = vector.broadcast %1 : f32 to vector<1x128xf32>
    %17 = arith.addf %15, %16 : vector<1x128xf32>
    %18 = arith.addf %10, %17 : vector<1x128xf32>
    %c0_1 = arith.constant 0 : index
    %c0_2 = arith.constant 0 : index
    %19 = vector.load %arg1[%c0_1, %c0_2] : memref<1x128xf32, #tpu.memory_space<vmem>>, vector<1x128xf32>
    tpu.vector_store %arg1[%c0_1, %c0_2], %18 {strides = array<i32>} : memref<1x128xf32, #tpu.memory_space<vmem>>, vector<1x128xf32>,
    return
  }
}

</mosaic_0001>

<bundles_post_ra>
// kernel: multi_task_loss.1
= control target key start
LH: loop header
LB: loop body
LE: loop exit
PB: predicated region body
PF: predicated region fallthrough
CT: control target
= control target key end

     0   :  { %6 = vsyncpa [#allocation4], 0  ;;  %s128_s0 = inlined_call_operand.vmem [shape: f32[4], index: 0, kind: input, shape index: {}]   ;;  %s129_s1 = inlined_call_operand.hbm [shape: f32[1,128], index: 1, kind: output, shape index: {}]  }
   0x1   :  { %7 = vsyncpa [#allocation3], 0  ;;  %s13_s8 = sshll.u32 %s128_s0, 4  ;;  %s110_s9 = smov [#allocation2]   ;;  %s14_s8 = int_to_ptr.vmem [resolvable:$true] %s13_s8 }
   0x2   :  { %16 = dma.vmem_to_smem %s14_s8, 16, %s110_s9, [#allocation4]  }
   0x3   :  { %106 = dma.done.wait [#allocation4], 16  }
   0x4   :  { %107 = vsyncadd [#allocation4], 4294967280 }
   0x5   :  { %21 = sfence }
   0x6   :  { %s22_s10 = sld [smem:[#allocation2]]  ;;  %s111_s0 = smov [#allocation5]  }
   0x7   :  { %s61_s11 = sld [smem:[#allocation2 + $0x1]]  ;;  %s49_s16 = sshll.u32 %s111_s0, 4  ;;  %s50_s16 = int_to_ptr.vmem [resolvable:$true] %s49_s16 }
   0x8   :  { %s62_s12 = sld [smem:[#allocation2 + $0x2]]  ;;  %s51_s19 = sshll.u32 %s129_s1, 4  ;;  %s52_s19 = int_to_ptr.hbm [resolvable:$true] %s51_s19 }
   0x9   :  { %s63_s15 = sld [smem:[#allocation2 + $0x3]] }
   0xc   :  { %s26_s13 = ssub.f32 0.0, %s22_s10  ;;  %v32_v7 = vstv %s22_s10 }
   0xd   :  { %s34_s14 = ssub.f32 0.0, %s61_s11  ;;  %v40_v10 = vstv %s61_s11 }
   0xe   :  { %v27_v0 = vstv %s26_s13  ;;  %v30_v4 = vstv %s62_s12 }
   0xf   :  { %v28_v1 = vmul.f32 1.442695, %v27_v0  ;;  %v35_v2 = vstv %s34_s14  ;;  %v38_v5 = vstv %s63_s15 }
  0x10   :  { %v36_v3 = vmul.f32 1.442695, %v35_v2 }
  0x11   :  { %66 = vpow2.f32 %v28_v1 }
  0x12   :  { %68 = vpow2.f32 %v36_v3 }
  0x17   :  { %v67_v6 = vpop.eup %66 }
  0x18   :  { %v69_v8 = vpop.eup %68  ;;  %v31_v9 = vmul.f32 %v67_v6, %v30_v4 }
  0x19   :  { %v39_v11 = vmul.f32 %v69_v8, %v38_v5 }
  0x1a   :  { %v33_v12 = vadd.f32 %v32_v7, %v31_v9 }
  0x1b   :  { %v41_v13 = vadd.f32 %v40_v10, %v39_v11 }
  0x1d   :  { %v42_v14 = vadd.f32 %v41_v13, %v33_v12 }
  0x1f   :  { %43 = vst [vmem:[#allocation5] sm:$0x1] %v42_v14 }
  0x20   :  { %54 = dma.vmem_to_hbm [thread:$0]  %s50_s16, 16, %s52_s19, [#allocation3]  }
  0x21   :  { %108 = dma.done.wait [#allocation3], 16  }
  0x22   :  { %109 = vsyncadd [#allocation3], 4294967280 }
  0x23   :  { %59 = vsyncpa [#allocation3], 1 }
  0x24   :  { %60 = vsyncpa [#allocation4], 1 }

</bundles_post_ra>
